<compile_context>
chip_gen: v6e
topology: v6e:2x2x1
jax: 0.10.0
libtpu: 0.0.40
codegen_flags: <defaults>
</compile_context>

<pallas_src>
import functools

import jax
import jax.numpy as jnp
from jax.experimental import pallas as pl
from jax.experimental.pallas import tpu as pltpu


def _round_up(x, m):
    return (x + m - 1) // m * m


def _make_heads_kernel(H, A, N, C, out_pad):
    """Builds the fused heads kernel for static sizes H, A, N, C."""
    # Column offsets inside the packed context matmul result.
    o_val = 0
    o_l0 = 1
    o_proj = 1 + A
    o_goal = 1 + A + H
    # Offsets inside the packed small-parameter row (wpc2^T | bpc1 | bpc2 | bpg2).
    r_wpc2 = 0
    r_bpc1 = H
    r_bpc2 = 2 * H
    r_bpg2 = 2 * H + 1
    used = 1 + A + 2 * N + C

    def kernel(ctx_ref, obj_ref, wctx_ref, bctx_ref, wpc1_ref, wpg2_ref,
               rows_ref, out_ref):
        ctx = ctx_ref[...]                         # [b, H]
        obj = obj_ref[...]                         # [b, N, H]
        b = ctx.shape[0]

        rows = rows_ref[...]                       # [1, 2H+1+C] (f32)
        wpc2_row = rows[:, r_wpc2:r_wpc2 + H]      # [1, H]  (= wpc2^T)
        bpc1 = rows[:, r_bpc1:r_bpc1 + H]          # [1, H]
        bpc2 = rows[:, r_bpc2:r_bpc2 + 1]          # [1, 1]
        bpg2 = rows[:, r_bpg2:r_bpg2 + C]          # [1, C]

        # --- one lane-dense MXU matmul for all four context-side heads -------
        packed = jnp.dot(ctx, wctx_ref[...],
                         preferred_element_type=jnp.float32) + bctx_ref[...]
        value = packed[:, o_val:o_val + 1]                     # critic_linear
        logits0 = packed[:, o_l0:o_l0 + A]                     # Categorical logits
        ctx_proj = packed[:, o_proj:o_proj + H]                # ElementWise proj
        h_goal = jnp.maximum(packed[:, o_goal:o_goal + H], 0.0)  # pred_goal L1+ReLU

        # --- dist[0] Categorical: softmax over actions ------------------------
        m0 = jnp.max(logits0, axis=-1, keepdims=True)
        e0 = jnp.exp(logits0 - m0)
        probs0 = e0 * pl.reciprocal(jnp.sum(e0, axis=-1, keepdims=True),
                                    approx=True)

        # --- dist[1] ElementWiseCategorical ('linear'): per-node dot + softmax -
        # TODO(synk): utils_rl_agent.update_probs validity masking is external.
        logits1 = jnp.sum(obj.astype(jnp.float32) * ctx_proj[:, None, :], axis=-1)
        m1 = jnp.max(logits1, axis=-1, keepdims=True)
        e1 = jnp.exp(logits1 - m1)
        probs1 = e1 * pl.reciprocal(jnp.sum(e1, axis=-1, keepdims=True),
                                    approx=True)                 # [b, N]

        # --- pred_close_net: flatten to 2-D, one contiguous MXU matmul --------
        obj2d = obj.reshape(b * N, H)
        h_close = jnp.maximum(
            jnp.dot(obj2d, wpc1_ref[...],
                    preferred_element_type=jnp.float32) + bpc1, 0.0)  # [b*N, H]
        h_close3 = h_close.reshape(b, N, H)
        # second layer (H -> 1) as VPU multiply + lane reduce (no narrow MXU pass)
        pred_close = jnp.sum(h_close3 * wpc2_row[:, None, :], axis=-1) + bpc2  # [b, N]

        # --- pred_goal_net second layer ---------------------------------------
        pred_goal = jnp.dot(h_goal, wpg2_ref[...],
                            preferred_element_type=jnp.float32) + bpg2  # [b, C]

        # --- one lane-dense output slab ----------------------------------------
        pieces = [value, probs0, probs1, pred_close, pred_goal]
        if out_pad > used:
            pieces.append(jnp.zeros((b, out_pad - used), jnp.float32))
        out_ref[...] = jnp.concatenate(pieces, axis=-1)

    return kernel


def actor_critic_heads(context_goal, object_goal, params, *,
                       compute_dtype=jnp.float32):
    """Runs the ActorCritic output heads in one Pallas call.

    Returns (value[B,1], action_probs[B,A], object_probs[B,N],
             pred_close[B,N,1], pred_goal[B,C]).
    compute_dtype=jnp.bfloat16 gives bf16-operand / f32-accumulate matmuls
    (recommended on v6e/v7x); elementwise softmax/ReLU math stays f32.
    """
    B, H = context_goal.shape
    _, N, _ = object_goal.shape
    A = params["wd0"].shape[1]
    C = params["wpg2"].shape[1]

    f32 = jnp.float32
    CTX_PAD = _round_up(1 + A + 2 * H, 128)       # packed ctx-head width
    used = 1 + A + 2 * N + C
    OUT_PAD = _round_up(used, 128)                # lane-dense output width

    # Packed context-side weight slab [H, CTX_PAD] and its bias row [1, CTX_PAD].
    w_ctx = jnp.zeros((H, CTX_PAD), f32)
    w_ctx = w_ctx.at[:, 0:1].set(params["wc"])
    w_ctx = w_ctx.at[:, 1:1 + A].set(params["wd0"])
    w_ctx = w_ctx.at[:, 1 + A:1 + A + H].set(params["we"])
    w_ctx = w_ctx.at[:, 1 + A + H:1 + A + 2 * H].set(params["wpg1"])
    b_ctx = jnp.zeros((1, CTX_PAD), f32)
    b_ctx = b_ctx.at[:, 0:1].set(params["bc"])
    b_ctx = b_ctx.at[:, 1:1 + A].set(params["bd0"])
    b_ctx = b_ctx.at[:, 1 + A:1 + A + H].set(params["be"])
    b_ctx = b_ctx.at[:, 1 + A + H:1 + A + 2 * H].set(params["bpg1"])

    # Packed small-parameter row: wpc2^T | bpc1 | bpc2 | bpg2  -> [1, 2H+1+C].
    rows = jnp.concatenate(
        [params["wpc2"].T, params["bpc1"], params["bpc2"], params["bpg2"]],
        axis=-1).astype(f32)

    cd = compute_dtype
    ctx_in = context_goal.astype(cd)
    obj_in = object_goal.astype(cd)
    w_ctx_in = w_ctx.astype(cd)
    wpc1_in = params["wpc1"].astype(cd)
    wpg2_in = params["wpg2"].astype(cd)

    # Batch tiling: resident weights, pipelined activations, parallel over B.
    # (Activation tiles here are tiny; well within v7x's 64 MiB VMEM even
    #  with double buffering — no vmem_limit_bytes override needed.)
    block_b = B if B <= 128 else 128
    assert B % block_b == 0, "batch must be a multiple of the batch tile"
    grid = (B // block_b,)

    kernel = _make_heads_kernel(H, A, N, C, OUT_PAD)

    flops = (2 * B * H * CTX_PAD          # packed ctx matmul
             + 2 * B * N * H * H          # pred_close L1
             + 2 * B * N * H              # pred_close L2 (mul+reduce)
             + 2 * B * N * H              # ElementWise logits
             + 2 * B * H * C)             # pred_goal L2
    transcendentals = B * (A + N + 2)     # exps + approx reciprocals
    inputs = (ctx_in, obj_in, w_ctx_in, b_ctx, wpc1_in, wpg2_in, rows)
    bytes_accessed = int(sum(x.size * x.dtype.itemsize for x in inputs)
                         + B * OUT_PAD * 4)

    slab = pl.pallas_call(
        kernel,
        out_shape=jax.ShapeDtypeStruct((B, OUT_PAD), jnp.float32),
        grid_spec=pltpu.PrefetchScalarGridSpec(
            num_scalar_prefetch=0,
            grid=grid,
            in_specs=[
                pl.BlockSpec((block_b, H), lambda i: (i, 0)),        # context_goal
                pl.BlockSpec((block_b, N, H), lambda i: (i, 0, 0)),  # object_goal
                pl.BlockSpec((H, CTX_PAD), lambda i: (0, 0)),        # packed ctx W
                pl.BlockSpec((1, CTX_PAD), lambda i: (0, 0)),        # packed ctx b
                pl.BlockSpec((H, H), lambda i: (0, 0)),              # wpc1
                pl.BlockSpec((H, C), lambda i: (0, 0)),              # wpg2
                pl.BlockSpec((1, 2 * H + 1 + C), lambda i: (0, 0)),  # packed row
            ],
            out_specs=pl.BlockSpec((block_b, OUT_PAD), lambda i: (i, 0)),
        ),
        compiler_params=pltpu.CompilerParams(
            dimension_semantics=("parallel",),
        ),
        cost_estimate=pl.CostEstimate(
            flops=flops,
            transcendentals=transcendentals,
            bytes_accessed=bytes_accessed,
        ),
    )(*inputs)

    # Slice the lane-dense slab apart (layout plumbing only).
    value = slab[:, 0:1]
    probs0 = slab[:, 1:1 + A]
    probs1 = slab[:, 1 + A:1 + A + N]
    pred_close = slab[:, 1 + A + N:1 + A + 2 * N].reshape(B, N, 1)
    pred_goal = slab[:, 1 + A + 2 * N:1 + A + 2 * N + C]
    return value, probs0, probs1, pred_close, pred_goal


def _init_params(key, hidden_size, num_actions, num_classes):
    """Deterministic synthetic parameter init (scaled normal, zero biases)."""
    ks = jax.random.split(key, 7)
    H, A, C = hidden_size, num_actions, num_classes
    s = 1.0 / jnp.sqrt(jnp.float32(H))
    return {
        "wc":   jax.random.normal(ks[0], (H, 1), jnp.float32) * s,
        "bc":   jnp.zeros((1, 1), jnp.float32),
        "wd0":  jax.random.normal(ks[1], (H, A), jnp.float32) * s,
        "bd0":  jnp.zeros((1, A), jnp.float32),
        "we":   jax.random.normal(ks[2], (H, H), jnp.float32) * s,
        "be":   jnp.zeros((1, H), jnp.float32),
        "wpc1": jax.random.normal(ks[3], (H, H), jnp.float32) * s,
        "bpc1": jnp.zeros((1, H), jnp.float32),
        "wpc2": jax.random.normal(ks[4], (H, 1), jnp.float32) * s,
        "bpc2": jnp.zeros((1, 1), jnp.float32),
        "wpg1": jax.random.normal(ks[5], (H, H), jnp.float32) * s,
        "bpg1": jnp.zeros((1, H), jnp.float32),
        "wpg2": jax.random.normal(ks[6], (H, C), jnp.float32) * s,
        "bpg2": jnp.zeros((1, C), jnp.float32),
    }


def _reference(context_goal, object_goal, p):
    """Pure-JAX reference of the same heads for correctness checking."""
    value = context_goal @ p["wc"] + p["bc"]
    l0 = context_goal @ p["wd0"] + p["bd0"]
    probs0 = jax.nn.softmax(l0, axis=-1)
    ctx_proj = context_goal @ p["we"] + p["be"]
    l1 = jnp.einsum("bnh,bh->bn", object_goal, ctx_proj)
    probs1 = jax.nn.softmax(l1, axis=-1)
    h_close = jax.nn.relu(jnp.einsum("bnh,hk->bnk", object_goal, p["wpc1"]) + p["bpc1"])
    pred_close = jnp.einsum("bnk,kj->bnj", h_close, p["wpc2"]) + p["bpc2"]
    h_goal = jax.nn.relu(context_goal @ p["wpg1"] + p["bpg1"])
    pred_goal = h_goal @ p["wpg2"] + p["bpg2"]
    return value, probs0, probs1, pred_close, pred_goal


if __name__ == "__main__":
    B, N, H = 2, 8, 32          # batch, object nodes, hidden_size
    A, C = 6, 10                # num actions (dist[0]), num_classes

    key = jax.random.PRNGKey(0)
    k_ctx, k_obj, k_par = jax.random.split(key, 3)

    # Synthetic outputs of self.base (GoalAttentionModel): context + per-node feats
    context_goal = jax.random.normal(k_ctx, (B, H), jnp.float32)
    object_goal = jax.random.normal(k_obj, (B, N, H), jnp.float32)
    params = _init_params(k_par, H, A, C)

    outs = actor_critic_heads(context_goal, object_goal, params)
    outs = jax.block_until_ready(outs)

    refs = _reference(context_goal, object_goal, params)
    for o, r in zip(outs, refs):
        assert o.shape == r.shape and o.dtype == r.dtype
        assert jnp.allclose(o, r, rtol=1e-3, atol=1e-3), "mismatch vs reference"

    print("KERNEL_OK")
</pallas_src>

<mosaic_0001>
module attributes {stable_mosaic.version = 11 : i64} {
  func.func @kernel(%arg0: i32, %arg1: memref<2x32xf32, #tpu.memory_space<vmem>>, %arg2: memref<2x8x32xf32, #tpu.memory_space<vmem>>, %arg3: memref<32x128xf32, #tpu.memory_space<vmem>>, %arg4: memref<1x128xf32, #tpu.memory_space<vmem>>, %arg5: memref<32x32xf32, #tpu.memory_space<vmem>>, %arg6: memref<32x10xf32, #tpu.memory_space<vmem>>, %arg7: memref<1x75xf32, #tpu.memory_space<vmem>>, %arg8: memref<2x128xf32, #tpu.memory_space<vmem>>) attributes {dimension_semantics = [#tpu.dimension_semantics<parallel>], iteration_bounds = array<i64: 1>, scalar_prefetch = 0 : i64, scratch_operands = 0 : i64, tpu.core_type = #tpu.core_type<tc>, window_params = [{transform_indices = @transform_0, window_bounds = array<i64: 2, 32>}, {transform_indices = @transform_1, window_bounds = array<i64: 2, 8, 32>}, {pipeline_mode = #tpu.pipeline_mode<synchronous>, transform_indices = @transform_2, window_bounds = array<i64: 32, 128>}, {pipeline_mode = #tpu.pipeline_mode<synchronous>, transform_indices = @transform_3, window_bounds = array<i64: 1, 128>}, {pipeline_mode = #tpu.pipeline_mode<synchronous>, transform_indices = @transform_4, window_bounds = array<i64: 32, 32>}, {pipeline_mode = #tpu.pipeline_mode<synchronous>, transform_indices = @transform_5, window_bounds = array<i64: 32, 10>}, {pipeline_mode = #tpu.pipeline_mode<synchronous>, transform_indices = @transform_6, window_bounds = array<i64: 1, 75>}, {transform_indices = @transform_7, window_bounds = array<i64: 2, 128>}]} {
    %c0 = arith.constant 0 : index
    %c0_0 = arith.constant 0 : index
    %0 = vector.load %arg1[%c0, %c0_0] : memref<2x32xf32, #tpu.memory_space<vmem>>, vector<2x32xf32>
    %c0_1 = arith.constant 0 : index
    %c0_2 = arith.constant 0 : index
    %c0_3 = arith.constant 0 : index
    %1 = vector.load %arg2[%c0_1, %c0_2, %c0_3] : memref<2x8x32xf32, #tpu.memory_space<vmem>>, vector<2x8x32xf32>
    %c0_4 = arith.constant 0 : index
    %c0_5 = arith.constant 0 : index
    %2 = vector.load %arg7[%c0_4, %c0_5] : memref<1x75xf32, #tpu.memory_space<vmem>>, vector<1x75xf32>
    %3 = vector.extract_strided_slice %2 {offsets = [0, 0], sizes = [1, 32], strides = [1, 1]} : vector<1x75xf32> to vector<1x32xf32>
    %4 = vector.extract_strided_slice %2 {offsets = [0, 32], sizes = [1, 32], strides = [1, 1]} : vector<1x75xf32> to vector<1x32xf32>
    %5 = vector.extract_strided_slice %2 {offsets = [0, 64], sizes = [1, 1], strides = [1, 1]} : vector<1x75xf32> to vector<1x1xf32>
    %6 = vector.extract_strided_slice %2 {offsets = [0, 65], sizes = [1, 10], strides = [1, 1]} : vector<1x75xf32> to vector<1x10xf32>
    %c0_6 = arith.constant 0 : index
    %c0_7 = arith.constant 0 : index
    %7 = vector.load %arg3[%c0_6, %c0_7] : memref<32x128xf32, #tpu.memory_space<vmem>>, vector<32x128xf32>
    %cst = arith.constant dense<0.000000e+00> : vector<2x128xf32>
    %8 = tpu.matmul %0, %7, %cst {dimension_numbers = #tpu.dot_dimension_numbers<[1], [0], [0], [1], [0, 0, 1, 1], [], []>} : vector<2x32xf32>, vector<32x128xf32>, vector<2x128xf32> -> vector<2x128xf32>
    %c0_8 = arith.constant 0 : index
    %c0_9 = arith.constant 0 : index
    %9 = vector.load %arg4[%c0_8, %c0_9] : memref<1x128xf32, #tpu.memory_space<vmem>>, vector<1x128xf32>
    %10 = vector.broadcast %9 : vector<1x128xf32> to vector<2x128xf32>
    %11 = arith.addf %8, %10 : vector<2x128xf32>
    %12 = vector.extract_strided_slice %11 {offsets = [0, 0], sizes = [2, 1], strides = [1, 1]} : vector<2x128xf32> to vector<2x1xf32>
    %13 = vector.extract_strided_slice %11 {offsets = [0, 1], sizes = [2, 6], strides = [1, 1]} : vector<2x128xf32> to vector<2x6xf32>
    %14 = vector.extract_strided_slice %11 {offsets = [0, 7], sizes = [2, 32], strides = [1, 1]} : vector<2x128xf32> to vector<2x32xf32>
    %15 = vector.extract_strided_slice %11 {offsets = [0, 39], sizes = [2, 32], strides = [1, 1]} : vector<2x128xf32> to vector<2x32xf32>
    %cst_10 = arith.constant 0.000000e+00 : f32
    %16 = vector.broadcast %cst_10 : f32 to vector<2x32xf32>
    %17 = arith.maximumf %15, %16 : vector<2x32xf32>
    %cst_11 = arith.constant dense<0xFF800000> : vector<2xf32>
    %18 = vector.multi_reduction <maximumf>, %13, %cst_11 [1] : vector<2x6xf32> to vector<2xf32>
    %19 = vector.shape_cast %18 : vector<2xf32> to vector<2x1xf32>
    %20 = vector.broadcast %19 : vector<2x1xf32> to vector<2x6xf32>
    %21 = arith.subf %13, %20 : vector<2x6xf32>
    %22 = math.exp %21 : vector<2x6xf32>
    %cst_12 = arith.constant dense<0.000000e+00> : vector<2xf32>
    %23 = vector.multi_reduction <add>, %22, %cst_12 [1] : vector<2x6xf32> to vector<2xf32>
    %24 = vector.shape_cast %23 : vector<2xf32> to vector<2x1xf32>
    %25 = tpu.reciprocal %24 {approx = true} : vector<2x1xf32> -> vector<2x1xf32>
    %26 = vector.broadcast %25 : vector<2x1xf32> to vector<2x6xf32>
    %27 = arith.mulf %22, %26 : vector<2x6xf32>
    %28 = vector.shape_cast %14 : vector<2x32xf32> to vector<2x1x32xf32>
    %29 = vector.broadcast %28 : vector<2x1x32xf32> to vector<2x8x32xf32>
    %30 = arith.mulf %1, %29 : vector<2x8x32xf32>
    %cst_13 = arith.constant dense<0.000000e+00> : vector<2x8xf32>
    %31 = vector.multi_reduction <add>, %30, %cst_13 [2] : vector<2x8x32xf32> to vector<2x8xf32>
    %cst_14 = arith.constant dense<0xFF800000> : vector<2xf32>
    %32 = vector.multi_reduction <maximumf>, %31, %cst_14 [1] : vector<2x8xf32> to vector<2xf32>
    %33 = vector.shape_cast %32 : vector<2xf32> to vector<2x1xf32>
    %34 = vector.broadcast %33 : vector<2x1xf32> to vector<2x8xf32>
    %35 = arith.subf %31, %34 : vector<2x8xf32>
    %36 = math.exp %35 : vector<2x8xf32>
    %cst_15 = arith.constant dense<0.000000e+00> : vector<2xf32>
    %37 = vector.multi_reduction <add>, %36, %cst_15 [1] : vector<2x8xf32> to vector<2xf32>
    %38 = vector.shape_cast %37 : vector<2xf32> to vector<2x1xf32>
    %39 = tpu.reciprocal %38 {approx = true} : vector<2x1xf32> -> vector<2x1xf32>
    %40 = vector.broadcast %39 : vector<2x1xf32> to vector<2x8xf32>
    %41 = arith.mulf %36, %40 : vector<2x8xf32>
    %42 = vector.shape_cast %1 : vector<2x8x32xf32> to vector<16x32xf32>
    %c0_16 = arith.constant 0 : index
    %c0_17 = arith.constant 0 : index
    %43 = vector.load %arg5[%c0_16, %c0_17] : memref<32x32xf32, #tpu.memory_space<vmem>>, vector<32x32xf32>
    %cst_18 = arith.constant dense<0.000000e+00> : vector<16x32xf32>
    %44 = tpu.matmul %42, %43, %cst_18 {dimension_numbers = #tpu.dot_dimension_numbers<[1], [0], [0], [1], [0, 0, 1, 1], [], []>} : vector<16x32xf32>, vector<32x32xf32>, vector<16x32xf32> -> vector<16x32xf32>
    %45 = vector.broadcast %4 : vector<1x32xf32> to vector<16x32xf32>
    %46 = arith.addf %44, %45 : vector<16x32xf32>
    %cst_19 = arith.constant 0.000000e+00 : f32
    %47 = vector.broadcast %cst_19 : f32 to vector<16x32xf32>
    %48 = arith.maximumf %46, %47 : vector<16x32xf32>
    %49 = vector.shape_cast %48 : vector<16x32xf32> to vector<2x8x32xf32>
    %50 = vector.shape_cast %3 : vector<1x32xf32> to vector<1x1x32xf32>
    %51 = vector.broadcast %50 : vector<1x1x32xf32> to vector<2x8x32xf32>
    %52 = arith.mulf %49, %51 : vector<2x8x32xf32>
    %cst_20 = arith.constant dense<0.000000e+00> : vector<2x8xf32>
    %53 = vector.multi_reduction <add>, %52, %cst_20 [2] : vector<2x8x32xf32> to vector<2x8xf32>
    %54 = vector.broadcast %5 : vector<1x1xf32> to vector<2x8xf32>
    %55 = arith.addf %53, %54 : vector<2x8xf32>
    %c0_21 = arith.constant 0 : index
    %c0_22 = arith.constant 0 : index
    %56 = vector.load %arg6[%c0_21, %c0_22] : memref<32x10xf32, #tpu.memory_space<vmem>>, vector<32x10xf32>
    %cst_23 = arith.constant dense<0.000000e+00> : vector<2x10xf32>
    %57 = tpu.matmul %17, %56, %cst_23 {dimension_numbers = #tpu.dot_dimension_numbers<[1], [0], [0], [1], [0, 0, 1, 1], [], []>} : vector<2x32xf32>, vector<32x10xf32>, vector<2x10xf32> -> vector<2x10xf32>
    %58 = vector.broadcast %6 : vector<1x10xf32> to vector<2x10xf32>
    %59 = arith.addf %57, %58 : vector<2x10xf32>
    %cst_24 = arith.constant 0.000000e+00 : f32
    %60 = vector.broadcast %cst_24 : f32 to vector<2x95xf32>
    %61 = tpu.concatenate %12, %27, %41, %55, %59, %60 in 1 : vector<2x1xf32>, vector<2x6xf32>, vector<2x8xf32>, vector<2x8xf32>, vector<2x10xf32>, vector<2x95xf32> -> vector<2x128xf32>
    %c0_25 = arith.constant 0 : index
    %c0_26 = arith.constant 0 : index
    %62 = vector.load %arg8[%c0_25, %c0_26] : memref<2x128xf32, #tpu.memory_space<vmem>>, vector<2x128xf32>
    tpu.vector_store %arg8[%c0_25, %c0_26], %61 {strides = array<i32>} : memref<2x128xf32, #tpu.memory_space<vmem>>, vector<2x128xf32>,
    return
  }
  func.func @transform_0(%arg0: i32) -> (i32, i32) {
    %c0_i32 = arith.constant 0 : i32
    %c0_i32_0 = arith.constant 0 : i32
    return %arg0, %c0_i32 : i32, i32
  }
  func.func @transform_1(%arg0: i32) -> (i32, i32, i32) {
    %c0_i32 = arith.constant 0 : i32
    %c0_i32_0 = arith.constant 0 : i32
    %c0_i32_1 = arith.constant 0 : i32
    return %arg0, %c0_i32, %c0_i32_0 : i32, i32, i32
  }
  func.func @transform_2(%arg0: i32) -> (i32, i32) {
    %c0_i32 = arith.constant 0 : i32
    %c0_i32_0 = arith.constant 0 : i32
    %c0_i32_1 = arith.constant 0 : i32
    return %c0_i32, %c0_i32_0 : i32, i32
  }
  func.func @transform_3(%arg0: i32) -> (i32, i32) {
    %c0_i32 = arith.constant 0 : i32
    %c0_i32_0 = arith.constant 0 : i32
    %c0_i32_1 = arith.constant 0 : i32
    return %c0_i32, %c0_i32_0 : i32, i32
  }
  func.func @transform_4(%arg0: i32) -> (i32, i32) {
    %c0_i32 = arith.constant 0 : i32
    %c0_i32_0 = arith.constant 0 : i32
    %c0_i32_1 = arith.constant 0 : i32
    return %c0_i32, %c0_i32_0 : i32, i32
  }
  func.func @transform_5(%arg0: i32) -> (i32, i32) {
    %c0_i32 = arith.constant 0 : i32
    %c0_i32_0 = arith.constant 0 : i32
    %c0_i32_1 = arith.constant 0 : i32
    return %c0_i32, %c0_i32_0 : i32, i32
  }
  func.func @transform_6(%arg0: i32) -> (i32, i32) {
    %c0_i32 = arith.constant 0 : i32
    %c0_i32_0 = arith.constant 0 : i32
    %c0_i32_1 = arith.constant 0 : i32
    return %c0_i32, %c0_i32_0 : i32, i32
  }
  func.func @transform_7(%arg0: i32) -> (i32, i32) {
    %c0_i32 = arith.constant 0 : i32
    %c0_i32_0 = arith.constant 0 : i32
    return %arg0, %c0_i32 : i32, i32
  }
}

</mosaic_0001>

<bundles_post_ra>
// kernel: tpu_custom_call.1
= control target key start
LH: loop header
LB: loop body
LE: loop exit
PB: predicated region body
PF: predicated region fallthrough
CT: control target
= control target key end

     0   :  { %12 = vsyncpa [#allocation3], 0  ;;  %s801_s0 = inlined_call_operand.vmem [shape: f32[2,32], index: 0, kind: input, shape index: {}]   ;;  %s802_s1 = inlined_call_operand.vmem [shape: f32[2,8,32], index: 1, kind: input, shape index: {}]   ;;  %s803_s2 = inlined_call_operand.vmem [shape: f32[32,128], index: 2, kind: input, shape index: {}]   ;;  %s804_s3 = inlined_call_operand.vmem [shape: f32[1,128], index: 3, kind: input, shape index: {}]   ;;  %s805_s4 = inlined_call_operand.hbm [shape: f32[32,32], index: 4, kind: input, shape index: {}]   ;;  %s806_s5 = inlined_call_operand.vmem [shape: f32[32,10], index: 5, kind: input, shape index: {}]   ;;  %s807_s6 = inlined_call_operand.vmem [shape: f32[1,75], index: 6, kind: input, shape index: {}]   ;;  %s808_s7 = inlined_call_operand.hbm [shape: f32[2,128], index: 7, kind: output, shape index: {}]  }
   0x1   :  { %13 = vsyncpa [#allocation4], 0  ;;  %s646_s24 = smov [#allocation2]  }
   0x2   :  { %s27_s25 = sshll.u32 %s646_s24, 4  ;;  %s28_s25 = int_to_ptr.vmem [resolvable:$true] %s27_s25 }
   0x3   :  { %s610_s26 = scalar_lea.vmem %s28_s25, 512  ;;  %p615_p1 = scmp.lt.s32.totalorder %s28_s25, %s28_s25 }
   0x4   :  { %p611_p0 = scmp.ne.s32.totalorder %s28_s25, %s610_s26  ;;  %p616_p2 = scmp.lt.s32.totalorder %s610_s26, %s610_s26 }
   0x6   :  { %p617_p3 = por %p616_p2, %p615_p1 }
   0x8   :  { %p618_p4 = pnand %p617_p3, %p611_p0 }
   0xa   :  { %621 = shalt.err (!%p618_p4)
}
   0xb   :  { %s647_s27 = smov 128   ;;  %s648_s28 = smov 8  }
   0xc   :  { %33 = dma.hbm_to_vmem [thread:$0]  %s805_s4, 512, %s28_s25, [#allocation3], %s647_s27, %s647_s27, %s648_s28  }
   0xd   :  { %642 = dma.done.wait [#allocation3], 512  }
   0xe   :  { %643 = vsyncadd [#allocation3], 4294966784  ;;  %v649_v0 = vmov 0.0   ;;  %vm650_vm0 = vmmov 0   ;;  %v48_v1 = vld [vmem:[%s803_s2 + $0x18] sm:$0xff]  ;;  %v47_v2 = vld [vmem:[%s803_s2 + $0x10] sm:$0xff]  ;;  %v152_v9 = vlaneseq }
   0xf   :  { %540 = vmatprep.subr.mxu0 %v649_v0  ;;  %548 = vmatprep.mubr.msk.f32.mxu0 %vm650_vm0, %v649_v0  ;;  %v46_v3 = vld [vmem:[%s803_s2 + $0x8] sm:$0xff]  ;;  %v45_v4 = vld [vmem:[%s803_s2] sm:$0xff]  ;;  %vm56_vm1 = vcmask 261120   ;;  %v651_v7 = vmov 1966171168   ;;  %s652_s19 = smov 121  }
  0x10   :  { %541 = vmatpush3.msra.mxu0 %v48_v1  ;;  %v41_v5 = vld [vmem:[%s801_s0] sm:$0x3]  ;;  %v150_v8 = vunpack.c.l.s4 %v651_v7  ;;  %v726_v11 = vshrl.u32 %v152_v9, 7  ;;  %v43_v26 = vld [vmem:[%s802_s1 + $0x8] sm:$0xff]  ;;  %v377_v31 = vld [vmem:[%s806_s5 + $0x18] sm:$0xff]  ;;  %s653_s28 = smov 89  }
  0x11   :  { %542 = vmatprep.subr.mxu0 %v649_v0  ;;  %v42_v6 = vld [vmem:[%s802_s1] sm:$0xff]  ;;  %v376_v32 = vld [vmem:[%s806_s5 + $0x10] sm:$0xff]  ;;  %v375_v33 = vld [vmem:[%s806_s5 + $0x8] sm:$0xff]  ;;  %vm131_vm2 = vcmask 50184   ;;  %v759_v37 = vand.u32 127, %v152_v9  ;;  %vm205_vm3 = vcmask 1041409  }
  0x12   :  { %543 = vmatpush3.msra.mxu0 %v47_v2  ;;  %559 = vmatprep.mubr.msk.f32.mxu1 %vm56_vm1, %v42_v6  ;;  %v151_v10 = vunpack.c.0.s8 %v150_v8  ;;  %v518_v12 = vld [vmem:[%s804_s3] ss:$0 sm:$0xff]  ;;  %v736_v18 = vsub.s32 0, %v726_v11  ;;  %vm208_vm4 = vcmask 58368   ;;  %v654_v46 = vmov 0   ;;  %v267_v47 = vld [vmem:[#allocation2 + $0x18] sm:$0xff] }
  0x13   :  { %544 = vmatprep.subr.mxu0 %v649_v0  ;;  %v374_v34 = vld [vmem:[%s806_s5] sm:$0xff]  ;;  %v763_v39 = vsub.s32 %v759_v37, %v726_v11  ;;  %589 = vset.pattern.permute.xlu1 %v654_v46  ;;  %v266_v48 = vld [vmem:[#allocation2 + $0x10] sm:$0xff]  ;;  %v265_v49 = vld [vmem:[#allocation2 + $0x8] sm:$0xff]  ;;  %v219_v51 = vsub.s32 1, %v726_v11  ;;  %s655_s5 = smov 127   ;;  %s656_s8 = smov 96  }
  0x14   :  { %545 = vmatpush3.msra.mxu0 %v46_v3  ;;  %v154_v13 = vsub.s32 %v151_v10, %v726_v11  ;;  %588 = vset.pattern.permute.xlu0 %v654_v46  ;;  %v264_v50 = vld [vmem:[#allocation2] sm:$0xff]  ;;  %s657_s9 = smov 63   ;;  %vm142_vm5 = vcmask 41984   ;;  %vm492_vm6 = vcmask 7168   ;;  %vm494_vm7 = vcmask 56320   ;;  %s660_s10 = smov [#allocation5]  }
  0x15   :  { %546 = vmatprep.subr.mxu0 %v649_v0  ;;  %551 = vmatprep.subr.mxu1 %v267_v47  ;;  %v520_v1 = vld [vmem:[%s807_s6] ss:$0 sm:$0xff]  ;;  %s659_s6 = smov 23   ;;  %vm496_vm8 = vcmask 121856   ;;  %vm498_vm9 = vcmask 187392   ;;  %s509_s11 = sshll.u32 %s660_s10, 4  ;;  %s510_s11 = int_to_ptr.vmem [resolvable:$true] %s509_s11 }
  0x16   :  { %547 = vmatpush3.msra.mxu0 %v45_v4  ;;  %552 = vmatpush3.msra.mxu1 %v267_v47  ;;  %vm500_vm10 = vcmask 269312   ;;  %s622_s12 = scalar_lea.vmem %s510_s11, 32  ;;  %p627_p6 = scmp.lt.s32.totalorder %s510_s11, %s510_s11 }
  0x17   :  { %549 = vmatmul.mubr.msk.f32.vlgmr.msra.gmra.mxu0 %vm56_vm1, %v41_v5  ;;  %562 = vmatprep.subr.mxu0 %v649_v0  ;;  %p623_p5 = scmp.ne.s32.totalorder %s510_s11, %s622_s12  ;;  %p628_p7 = scmp.lt.s32.totalorder %s622_s12, %s622_s12 }
  0x18   :  { %570 = vmatprep.mubr.msk.f32.mxu0 %vm650_vm0, %v649_v0  ;;  %563 = vmatpush3.msra.mxu0 %v377_v31 }
  0x19   :  { %564 = vmatprep.subr.mxu0 %v649_v0  ;;  %553 = vmatprep.subr.mxu1 %v266_v48  ;;  %p629_p8 = por %p628_p7, %p627_p6 }
  0x1a   :  { %565 = vmatpush3.msra.mxu0 %v376_v32  ;;  %554 = vmatpush3.msra.mxu1 %v266_v48 }
  0x1b   :  { %566 = vmatprep.subr.mxu0 %v649_v0  ;;  %555 = vmatprep.subr.mxu1 %v265_v49  ;;  %p630_p9 = pnand %p629_p8, %p623_p5 }
  0x1c   :  { %567 = vmatpush3.msra.mxu0 %v375_v33  ;;  %556 = vmatpush3.msra.mxu1 %v265_v49 }
  0x1d   :  { %568 = vmatprep.subr.mxu0 %v649_v0  ;;  %557 = vmatprep.subr.mxu1 %v264_v50 }
  0x1e   :  { %569 = vmatpush3.msra.mxu0 %v374_v34  ;;  %558 = vmatpush3.msra.mxu1 %v264_v50 }
  0x1f   :  { %560 = vmatmul.mubr.msk.f32.vlgmr.msra.gmra.mxu1 %vm56_vm1, %v43_v26 }
  0xd7   :  { %v126_v14 = vpop.f32.mrf.mxu0 }
  0xd8   :  { %v732_v15 = vadd.f32 %v518_v12, %v126_v14 }
  0xd9   :  { %v550_v16 = vpop.f32.mrf.mxu0 }
  0xda   :  { %v155_v17 = vrot.slane %v732_v15, %v154_v13  ;;  %v130_v35 = vmax.f32 %v732_v15, 0.0  ;;  %v132_v36 = vsel %vm131_vm2, %v732_v15, -inf }
  0xdc   :  { %v163_v19 = vrot.slane %v155_v17, %v154_v13  ;;  %v156_v20 = vcombine.high %v155_v17, %v155_v17 }
  0xde   :  { %v174_v21 = vrot.slane %v163_v19, %v736_v18  ;;  %v170_v22 = vrot.slane %v156_v20, %v154_v13 }
  0xdf   :  { %v561_v8 = vpop.f32.mrf.mxu1 }
  0xe0   :  { %179 = vrot.lane.b32.xlu0 %v174_v21, %s652_s19  ;;  %v178_v23 = vrot.slane %v170_v22, %v736_v18 }
  0xe1   :  { %v348_v14 = vpop.f32.mrf.mxu1 }
  0xe4   :  { %181 = vrot.lane.b32.xlu0 %v178_v23, %s652_s19 }
 0x152   :  { %v180_v24 = vpop.permute.xlu0 %179 }
 0x153   :  { %v185_v25 = vmul.f32 %v180_v24, %v42_v6 }
 0x155   :  { %v187_v27 = vsel %vm56_vm1, %v185_v25, 0.0 }
 0x156   :  { %188 = vadd.xlane.f32.xlu1 %v187_v27  ;;  %v182_v28 = vpop.permute.xlu0 %181 }
 0x157   :  { %v186_v29 = vmul.f32 %v182_v28, %v43_v26  ;;  %v658_v26 = vmov 64  }
 0x159   :  { %v190_v30 = vsel %vm56_vm1, %v186_v29, 0.0 }
 0x15a   :  { %191 = vadd.xlane.f32.xlu1 %v190_v30 }
 0x16b   :  { %379 = vrot.lane.b32.xlu1 %v130_v35, %s653_s28 }
 0x18f   :  { %133 = vmax.xlane.f32.xlu1 %v132_v36 }
 0x1df   :  { %v189_v38 = vpop.xlane.xlu1 %188 }
 0x1e0   :  { %v200_v41 = vrot.slane %v189_v38, %v763_v39 }
 0x1e3   :  { %v192_v40 = vpop.xlane.xlu1 %191 }
 0x1e4   :  { %v204_v42 = vrot.slane %v192_v40, %v763_v39 }
 0x1e6   :  { %v206_v43 = vsel %vm205_vm3, %v204_v42, %v200_v41  ;;  %v464_v41 = vadd.s32 4294967289, %v759_v37 }
 0x1e7   :  { %v380_v44 = vpop.permute.xlu1 %379  ;;  %v209_v45 = vsel %vm208_vm4, %v206_v43, -inf }
 0x1e8   :  { %210 = vmax.xlane.f32.xlu0 %v209_v45  ;;  %571 = vmatmul.mubr.msk.f32.vlgmr.msra.gmra.mxu0 %vm56_vm1, %v380_v44  ;;  %v467_v45 = vsub.s32 %v464_v41, %v726_v11 }
 0x218   :  { %v134_v52 = vpop.xlane.xlu1 %133 }
 0x219   :  { %v135_v56 = vsub.f32 %v732_v15, %v134_v52 }
 0x21b   :  { %v136_v61 = vmul.f32 1.442695, %v135_v56 }
 0x271   :  { %v211_v53 = vpop.xlane.xlu0 %210 }
 0x272   :  { %v216_v54 = vrot.slane %v211_v53, %v736_v18  ;;  %v220_v55 = vrot.slane %v211_v53, %v219_v51 }
 0x274   :  { %v223_v57 = vsub.f32 %v189_v38, %v216_v54  ;;  %v224_v58 = vsub.f32 %v192_v40, %v220_v55 }
 0x276   :  { %v225_v59 = vmul.f32 1.442695, %v223_v57  ;;  %v227_v60 = vmul.f32 1.442695, %v224_v58 }
 0x278   :  { %592 = vpow2.f32 %v225_v59 }
 0x279   :  { %594 = vpow2.f32 %v227_v60 }
 0x27a   :  { %596 = vpow2.f32 %v136_v61 }
 0x285   :  { %v593_v62 = vpop.eup %592 }
 0x286   :  { %v595_v63 = vpop.eup %594  ;;  %232 = vperm.xlu0 %588, %v593_v62  }
 0x287   :  { %235 = vperm.xlu1 %589, %v595_v63   ;;  %v776_v0 = vpop.eup %596 }
 0x28a   :  { %139 = vrot.lane.b32.xlu0 %v776_v0, %s655_s5 }
 0x28b   :  { %590 = vset.pattern.permute.xlu1 %v658_v26 }
 0x28e   :  { %273 = vrot.lane.b32.xlu0 %v520_v1, %s656_s8 }
 0x292   :  { %381 = vrot.lane.b32.xlu0 %v520_v1, %s657_s9 }
 0x2a8   :  { %v452_v2 = vpop.f32.mrf.mxu0 }
 0x2aa   :  { %v572_v3 = vpop.f32.mrf.mxu0 }
 0x301   :  { %v233_v4 = vpop.permute.xlu0 %232 }
 0x302   :  { %v240_v5 = vrot.slane %v233_v4, %v763_v39  ;;  %v236_v6 = vpop.permute.xlu1 %235 }
 0x303   :  { %v244_v7 = vrot.slane %v236_v6, %v763_v39  ;;  %v477_v39 = vadd.s32 4294967281, %v759_v37 }
 0x305   :  { %v140_v9 = vpop.permute.xlu0 %139  ;;  %v245_v10 = vsel %vm205_vm3, %v244_v7, %v240_v5 }
 0x306   :  { %v247_v12 = vsel %vm208_vm4, %v245_v10, 0.0  ;;  %v143_v13 = vsel %vm142_vm5, %v140_v9, 0.0 }
 0x307   :  { %248 = vadd.xlane.f32.xlu1 %v247_v12  ;;  %144 = vadd.xlane.f32.xlu0 %v143_v13 }
 0x309   :  { %v274_v16 = vpop.permute.xlu0 %273 }
 0x30a   :  { %v354_v17 = vadd.f32 %v561_v8, %v274_v16  ;;  %v349_v19 = vadd.f32 %v348_v14, %v274_v16 }
 0x30c   :  { %v358_v20 = vmax.f32 %v354_v17, 0.0  ;;  %v357_v21 = vmax.f32 %v349_v19, 0.0 }
 0x30d   :  { %v382_v33 = vpop.permute.xlu0 %381 }
 0x30e   :  { %v360_v22 = vmul.f32 %v520_v1, %v357_v21  ;;  %v361_v23 = vmul.f32 %v520_v1, %v358_v20  ;;  %v453_v34 = vadd.f32 %v452_v2, %v382_v33 }
 0x310   :  { %v362_v24 = vsel %vm56_vm1, %v360_v22, 0.0  ;;  %v365_v25 = vsel %vm56_vm1, %v361_v23, 0.0 }
 0x311   :  { %363 = vadd.xlane.f32.xlu1 %v362_v24 }
 0x315   :  { %366 = vadd.xlane.f32.xlu1 %v365_v25 }
 0x326   :  { %369 = vperm.xlu1 %590, %v520_v1  }
 0x32a   :  { %591 = vset.pattern.permute.xlu1 %v654_v46 }
 0x390   :  { %v249_v27 = vpop.xlane.xlu1 %248  ;;  %v145_v35 = vpop.xlane.xlu0 %144 }
 0x391   :  { %598 = vrcp.f32 %v249_v27 }
 0x392   :  { %600 = vrcp.f32 %v145_v35 }
 0x39a   :  { %v364_v36 = vpop.xlane.xlu1 %363 }
 0x39e   :  { %v599_v28 = vpop.eup %598  ;;  %v367_v38 = vpop.xlane.xlu1 %366 }
 0x39f   :  { %v259_v29 = vrot.slane %v599_v28, %v219_v51  ;;  %v255_v30 = vrot.slane %v599_v28, %v736_v18  ;;  %v601_v42 = vpop.eup %600  ;;  %v480_v18 = vsub.s32 %v477_v39, %v726_v11 }
 0x3a0   :  { %v147_v46 = vmul.f32 %v601_v42, %v776_v0 }
 0x3a1   :  { %v263_v31 = vmul.f32 %v595_v63, %v259_v29  ;;  %v262_v32 = vmul.f32 %v593_v62, %v255_v30 }
 0x3a2   :  { %v370_v40 = vpop.permute.xlu1 %369  ;;  %v493_v53 = vsel %vm492_vm6, %v732_v15, %v147_v46 }
 0x3a3   :  { %462 = vperm.xlu1 %591, %v263_v31   ;;  %459 = vperm.xlu0 %588, %v262_v32   ;;  %v372_v43 = vadd.f32 %v370_v40, %v364_v36  ;;  %v373_v44 = vadd.f32 %v370_v40, %v367_v38 }
 0x3a5   :  { %v481_v47 = vrot.slane %v372_v43, %v480_v18  ;;  %v485_v48 = vrot.slane %v373_v44, %v480_v18 }
 0x3a7   :  { %489 = vrot.lane.b32.xlu1 %v453_v34, %s659_s6  ;;  %v486_v11 = vsel %vm205_vm3, %v485_v48, %v481_v47 }
 0x41e   :  { %v460_v49 = vpop.permute.xlu0 %459  ;;  %v463_v50 = vpop.permute.xlu1 %462 }
 0x41f   :  { %v468_v51 = vrot.slane %v460_v49, %v467_v45  ;;  %v472_v52 = vrot.slane %v463_v50, %v467_v45 }
 0x421   :  { %v473_v37 = vsel %vm205_vm3, %v472_v52, %v468_v51 }
 0x422   :  { %v495_v54 = vsel %vm494_vm7, %v493_v53, %v473_v37  ;;  %v490_v55 = vpop.permute.xlu1 %489 }
 0x423   :  { %v497_v56 = vsel %vm496_vm8, %v495_v54, %v486_v11 }
 0x424   :  { %v499_v57 = vsel %vm498_vm9, %v497_v56, %v490_v55 }
 0x425   :  { %v501_v58 = vsel %vm500_vm10, %v499_v57, 0.0 }
 0x426   :  { %502 = vst [vmem:[#allocation5] sm:$0x3] %v501_v58 }
 0x427   :  { %633 = shalt.err (!%p630_p9)
}
 0x428   :  { %512 = dma.vmem_to_hbm [thread:$0]  %s510_s11, 32, %s808_s7, [#allocation4]  }
 0x429   :  { %644 = dma.done.wait [#allocation4], 32  }
 0x42a   :  { %645 = vsyncadd [#allocation4], 4294967264 }
 0x42b   :  { %516 = vsyncpa [#allocation3], 1 }
 0x42c   :  { %517 = vsyncpa [#allocation4], 1 }

</bundles_post_ra>
